<compile_context>
chip_gen: v6e
topology: v6e:2x2x1
jax: 0.10.0
libtpu: 0.0.40
codegen_flags: <defaults>
</compile_context>

<pallas_src>
import jax
import jax.numpy as jnp
from jax.experimental import pallas as pl
from jax.experimental.pallas import tpu as pltpu


def _vmem_limit_bytes() -> int:
    """Per-generation scoped-VMEM cap (v5e/v6e: 128 MiB, v7x: 64 MiB/TC)."""
    cap = 64 * 1024 * 1024  # conservative default: v7x per-TensorCore VMEM
    try:
        info = pltpu.get_tpu_info()
        cap = int(getattr(info, "vmem_capacity_bytes", cap)) or cap
    except Exception:
        pass
    # Tiles only need a few MiB; leave ample headroom for compiler scratch.
    return min(cap // 2, 48 * 1024 * 1024)


def tied_output_head_kernel(hidden_ref, wte_ref, bias_ref, logits_ref):
    """One (tm, tn) tile of: logits = hidden @ wte.T + bias.

    hidden_ref : (tm, D)  bf16  embedded-token row tile (resident across j)
    wte_ref    : (tn, D)  bf16  embedding-table row tile (streamed)
    bias_ref   : (1, tn)  f32   zero-padded output-embedding bias tile
    logits_ref : (tm, tn) bf16  tied-head logits tile
    """
    # Contract the last dim of both operands: feeds the MXU directly with no
    # in-kernel transpose/copy of the embedding-table tile; f32 accumulation.
    acc = jax.lax.dot_general(
        hidden_ref[...],
        wte_ref[...],
        dimension_numbers=(((1,), (1,)), ((), ())),
        preferred_element_type=jnp.float32,
    )
    logits_ref[...] = (acc + bias_ref[...]).astype(logits_ref.dtype)


def physformer_base_forward(token_ids, wte_weight, out_bias, *,
                            wte_cast=None,
                            tm=1024, tn=512,
                            compute_dtype=jnp.bfloat16,
                            logits_dtype=jnp.bfloat16):
    """Embed tokens (gather) + tied output projection (Pallas, tiled)."""
    B, S = token_ids.shape
    V, D = wte_weight.shape
    N = B * S
    ids = token_ids.reshape(N)

    # ---- embedding lookup: exact f32 gather (module semantics) -------------
    hidden = wte_weight[ids]                                    # (N, D) f32

    # ---- hoisted bf16 copy of the tied table --------------------------------
    # Pass `wte_cast` in (cached across calls) to avoid the per-call (V, D)
    # cast pass; the MXU operand is gathered straight from the bf16 table so
    # there is no (N, D) cast pass either.
    if wte_cast is None:
        wte_cast = wte_weight.astype(compute_dtype)
    hidden_c = wte_cast[ids]                                    # (N, D) bf16

    bias_row = out_bias.astype(jnp.float32).reshape(1, V)

    # ---- tile selection (no padding, no output slice) -----------------------
    # tm: multiple of 16 (bf16 packs 2 rows/sublane) or the full row extent.
    # tn: multiple of 128 (lane-dense output) or the full vocab extent; when
    #     V > tn the vocab axis has >=2 blocks so both v7x TCs get work.
    tm_eff = N if N <= tm else tm
    tn_eff = V if V <= tn else tn
    grid = (pl.cdiv(N, tm_eff), pl.cdiv(V, tn_eff))

    cost = pl.CostEstimate(
        flops=2 * N * V * D,
        transcendentals=0,
        bytes_accessed=(2 * N * D                         # hidden (bf16) read
                        + 2 * V * D * grid[0]             # wte streamed per row tile
                        + jnp.dtype(logits_dtype).itemsize * N * V),  # logits write
    )

    logits = pl.pallas_call(
        tied_output_head_kernel,
        out_shape=jax.ShapeDtypeStruct((N, V), logits_dtype),
        grid=grid,
        in_specs=[
            # Row (hidden) tile is held across the inner vocab axis; wte and
            # bias tiles stream.  tm >= tn so the resident tile is the larger
            # one, minimizing streamed input bytes.
            pl.BlockSpec((tm_eff, D), lambda i, j: (i, 0)),
            pl.BlockSpec((tn_eff, D), lambda i, j: (j, 0)),
            pl.BlockSpec((1, tn_eff), lambda i, j: (0, j)),
        ],
        out_specs=pl.BlockSpec((tm_eff, tn_eff), lambda i, j: (i, j)),
        compiler_params=pltpu.CompilerParams(
            dimension_semantics=("parallel", "parallel"),
            vmem_limit_bytes=_vmem_limit_bytes(),
        ),
        cost_estimate=cost,
    )(hidden_c, wte_cast, bias_row)

    return hidden.reshape(B, S, D), logits.reshape(B, S, V)


if __name__ == "__main__":
    # Small config consistent with the module's __init__ conventions.
    B, S = 2, 8               # batch, sequence
    V, D = 64, 32             # vocab (num_embeddings), n_embd (hidden)
    initializer_range = 0.02  # config.initializer_range used by _init_weights

    key = jax.random.PRNGKey(0)
    k_wte, k_tok = jax.random.split(key)

    # _init_weights: Embedding weight ~ N(0, initializer_range); Linear bias -> 0.
    wte_weight = initializer_range * jax.random.normal(k_wte, (V, D), dtype=jnp.float32)
    # tie_weights pads the output-embedding bias with zeros to length V.
    out_bias = jnp.zeros((V,), dtype=jnp.float32)

    token_ids = jax.random.randint(k_tok, (B, S), 0, V, dtype=jnp.int32)

    # Hoisted bf16 copy of the tied embedding table (cache once, reuse per call).
    wte_bf16 = wte_weight.astype(jnp.bfloat16)

    hidden, logits = physformer_base_forward(token_ids, wte_weight, out_bias,
                                             wte_cast=wte_bf16)
    jax.block_until_ready((hidden, logits))

    # Pure-JAX f32 reference.
    hidden_ref = wte_weight[token_ids]                                   # (B, S, D)
    logits_ref = jnp.einsum("bsd,vd->bsv", hidden_ref, wte_weight) + out_bias

    assert hidden.shape == (B, S, D) and logits.shape == (B, S, V)
    # Hidden is an exact f32 gather.
    assert jnp.allclose(hidden, hidden_ref, atol=1e-6, rtol=1e-6)
    # Logits use bf16 MXU inputs + bf16 output with f32 accumulation -> loose tol.
    assert jnp.allclose(logits.astype(jnp.float32), logits_ref, atol=5e-4, rtol=5e-2)

    print("KERNEL_OK")
</pallas_src>

<mosaic_0001>
module attributes {stable_mosaic.version = 11 : i64} {
  func.func @tied_output_head_kernel(%arg0: i32, %arg1: i32, %arg2: memref<16x32xbf16, #tpu.memory_space<vmem>>, %arg3: memref<64x32xbf16, #tpu.memory_space<vmem>>, %arg4: memref<1x64xf32, #tpu.memory_space<vmem>>, %arg5: memref<16x64xbf16, #tpu.memory_space<vmem>>) attributes {dimension_semantics = [#tpu.dimension_semantics<parallel>, #tpu.dimension_semantics<parallel>], iteration_bounds = array<i64: 1, 1>, scalar_prefetch = 0 : i64, scratch_operands = 0 : i64, tpu.core_type = #tpu.core_type<tc>, window_params = [{transform_indices = @transform_0, window_bounds = array<i64: 16, 32>}, {transform_indices = @transform_1, window_bounds = array<i64: 64, 32>}, {transform_indices = @transform_2, window_bounds = array<i64: 1, 64>}, {transform_indices = @transform_3, window_bounds = array<i64: 16, 64>}]} {
    %c0 = arith.constant 0 : index
    %c0_0 = arith.constant 0 : index
    %0 = vector.load %arg2[%c0, %c0_0] : memref<16x32xbf16, #tpu.memory_space<vmem>>, vector<16x32xbf16>
    %c0_1 = arith.constant 0 : index
    %c0_2 = arith.constant 0 : index
    %1 = vector.load %arg3[%c0_1, %c0_2] : memref<64x32xbf16, #tpu.memory_space<vmem>>, vector<64x32xbf16>
    %cst = arith.constant dense<0.000000e+00> : vector<16x64xf32>
    %2 = tpu.matmul %0, %1, %cst {dimension_numbers = #tpu.dot_dimension_numbers<[1], [1], [0], [0], [0, 0, 1, 0], [], []>} : vector<16x32xbf16>, vector<64x32xbf16>, vector<16x64xf32> -> vector<16x64xf32>
    %c0_3 = arith.constant 0 : index
    %c0_4 = arith.constant 0 : index
    %3 = vector.load %arg4[%c0_3, %c0_4] : memref<1x64xf32, #tpu.memory_space<vmem>>, vector<1x64xf32>
    %4 = vector.broadcast %3 : vector<1x64xf32> to vector<16x64xf32>
    %5 = arith.addf %2, %4 : vector<16x64xf32>
    %6 = arith.truncf %5 : vector<16x64xf32> to vector<16x64xbf16>
    %c0_5 = arith.constant 0 : index
    %c0_6 = arith.constant 0 : index
    %7 = vector.load %arg5[%c0_5, %c0_6] : memref<16x64xbf16, #tpu.memory_space<vmem>>, vector<16x64xbf16>
    tpu.vector_store %arg5[%c0_5, %c0_6], %6 {strides = array<i32>} : memref<16x64xbf16, #tpu.memory_space<vmem>>, vector<16x64xbf16>,
    return
  }
  func.func @transform_0(%arg0: i32, %arg1: i32) -> (i32, i32) {
    %c0_i32 = arith.constant 0 : i32
    %c0_i32_0 = arith.constant 0 : i32
    return %arg0, %c0_i32 : i32, i32
  }
  func.func @transform_1(%arg0: i32, %arg1: i32) -> (i32, i32) {
    %c0_i32 = arith.constant 0 : i32
    %c0_i32_0 = arith.constant 0 : i32
    return %arg1, %c0_i32 : i32, i32
  }
  func.func @transform_2(%arg0: i32, %arg1: i32) -> (i32, i32) {
    %c0_i32 = arith.constant 0 : i32
    %c0_i32_0 = arith.constant 0 : i32
    return %c0_i32, %arg1 : i32, i32
  }
  func.func @transform_3(%arg0: i32, %arg1: i32) -> (i32, i32) {
    %c0_i32 = arith.constant 0 : i32
    return %arg0, %arg1 : i32, i32
  }
}

</mosaic_0001>

<bundles_post_ra>
// kernel: tpu_custom_call.1
= control target key start
LH: loop header
LB: loop body
LE: loop exit
PB: predicated region body
PF: predicated region fallthrough
CT: control target
= control target key end

     0   :  { %v202_v1 = vmov 0.0   ;;  %vm58_vm0 = vcmask 261120   ;;  %vm203_vm1 = vmmov 0   ;;  %s253_s0 = inlined_call_operand.vmem [shape: bf16[16,32], index: 0, kind: input, shape index: {}]   ;;  %s254_s1 = inlined_call_operand.vmem [shape: bf16[64,32], index: 1, kind: input, shape index: {}]   ;;  %s255_s2 = inlined_call_operand.vmem [shape: f32[1,64], index: 2, kind: input, shape index: {}]   ;;  %s256_s3 = inlined_call_operand.hbm [shape: bf16[16,64], index: 3, kind: output, shape index: {}]  }
   0x1   :  { %v175_v0 = vld [vmem:[%s254_s1 + $0x18] sm:$0xff]   ;;  %158 = vmatprep.subr.bf16.mxu0 %v202_v1  ;;  %v176_v3 = vld [vmem:[%s254_s1 + $0x10] sm:$0xff]   ;;  %166 = vmatprep.mubr.msk.bf16.mxu0 %vm203_vm1, %v202_v1 }
   0x2   :  { %v72_v2 = vsel %vm58_vm0, %v175_v0, 0 }
   0x3   :  { %159 = vmatpush3.bf16.xpose.msra.mxu0 %v72_v2 }
   0x4   :  { %160 = vmatprep.subr.bf16.mxu0 %v202_v1 }
   0x5   :  { %8 = vsyncpa [#allocation3], 0  ;;  %v69_v4 = vsel %vm58_vm0, %v176_v3, 0  ;;  %v177_v5 = vld [vmem:[%s254_s1 + $0x8] sm:$0xff]   ;;  %v178_v7 = vld [vmem:[%s254_s1] sm:$0xff]   ;;  %vm123_vm2 = vcmask 519168  }
   0x6   :  { %v66_v6 = vsel %vm58_vm0, %v177_v5, 0  ;;  %v63_v8 = vsel %vm58_vm0, %v178_v7, 0  ;;  %v179_v9 = vld [vmem:[%s253_s0] sm:$0xff]   ;;  %s204_s24 = smov [#allocation2]  }
   0x7   :  { %v142_v10 = vld [vmem:[%s255_s2] ss:$0 sm:$0xff]  ;;  %s131_s1 = sshll.u32 %s204_s24, 4  ;;  %s132_s1 = int_to_ptr.vmem [resolvable:$true] %s131_s1 }
   0x8   :  { %s180_s0 = scalar_lea.vmem %s132_s1, 128  ;;  %p185_p1 = scmp.lt.s32.totalorder %s132_s1, %s132_s1 }
   0x9   :  { %p181_p0 = scmp.ne.s32.totalorder %s132_s1, %s180_s0  ;;  %p186_p2 = scmp.lt.s32.totalorder %s180_s0, %s180_s0 }
   0xb   :  { %161 = vmatpush3.bf16.xpose.msra.mxu0 %v69_v4  ;;  %p187_p3 = por %p186_p2, %p185_p1 }
   0xc   :  { %162 = vmatprep.subr.bf16.mxu0 %v202_v1 }
   0xd   :  { %p188_p4 = pnand %p187_p3, %p181_p0 }
  0x13   :  { %163 = vmatpush3.bf16.xpose.msra.mxu0 %v66_v6 }
  0x14   :  { %164 = vmatprep.subr.bf16.mxu0 %v202_v1 }
  0x1b   :  { %165 = vmatpush3.bf16.xpose.msra.mxu0 %v63_v8 }
  0x22   :  { %167 = vmatmul.mubr.msk.bf16.vlgmr.msra.gmra.mxu0 %vm58_vm0, %v179_v9 }
  0xe2   :  { %v108_v11 = vpop.f32.mrf.mxu0 }
  0xe3   :  { %v109_v12 = vadd.f32 %v142_v10, %v108_v11 }
  0xe4   :  { %v168_v13 = vpop.f32.mrf.mxu0 }
  0xe5   :  { %v151_v14 = vpack.c.bf16 %v109_v12, %v109_v12 }
  0xe6   :  { %v111_v15 = vpop.f32.mrf.mxu0 }
  0xe7   :  { %124 = vst.msk [vmem:[#allocation2] sm:$0xf] %vm123_vm2, %v151_v14  ;;  %v112_v16 = vadd.f32 %v142_v10, %v111_v15 }
  0xe8   :  { %v169_v17 = vpop.f32.mrf.mxu0 }
  0xe9   :  { %v152_v18 = vpack.c.bf16 %v112_v16, %v112_v16 }
  0xeb   :  { %125 = vst.msk [vmem:[#allocation2 + $0x4] sm:$0xf] %vm123_vm2, %v152_v18 }
  0xec   :  { %191 = shalt.err (!%p188_p4)
}
  0xed   :  { %s205_s2 = smov 64   ;;  %s206_s25 = smov 4  }
  0xee   :  { %137 = dma.vmem_to_hbm [thread:$0]  %s132_s1, 128, %s256_s3, [#allocation3], %s205_s2, %s205_s2, %s206_s25  }
  0xef   :  { %200 = dma.done.wait [#allocation3], 128  }
  0xf0   :  { %201 = vsyncadd [#allocation3], 4294967168 }
  0xf1   :  { %141 = vsyncpa [#allocation3], 1 }

</bundles_post_ra>
